<compile_context>
chip_gen: v7x
topology: tpu7x:2x2x1
jax: 0.10.0
libtpu: 0.0.40
codegen_flags: <defaults>
</compile_context>

<pallas_src>
import functools

import jax
import jax.numpy as jnp
from jax.experimental import pallas as pl
from jax.experimental.pallas import tpu as pltpu

_LANE = 128                       # vreg lane width
_TH_CAP = 8192                    # max spatial tile (lanes)
_VMEM_BUDGET_BYTES = 8 * 1024 * 1024  # per-kernel tile budget (in+out, dbl-buffered)


def _round_up(n, m):
    return ((n + m - 1) // m) * m


def _l2n_kernel(x_ref, o_ref, *, eps):
    # x_ref / o_ref: (1, C, TH) block in VMEM.  Each lane column is independent;
    # the reduction over channels (PyTorch dim=1) is a sublane-axis reduction.
    x = x_ref[...].astype(jnp.float32)               # (1, C, TH)
    sq_sum = jnp.sum(x * x, axis=1, keepdims=True)   # (1, 1, TH)
    denom = jnp.sqrt(sq_sum) + eps                   # matches torch: x / (norm + eps)
    # EUP approximate reciprocal + one Newton-Raphson step -> full f32 accuracy
    # while keeping the divide off the VPU (free EUP slot on an HBM-bound kernel).
    r = pl.reciprocal(denom, approx=True)
    r = r * (2.0 - denom * r)
    o_ref[...] = (x * r).astype(o_ref.dtype)


def l2n_pallas(x, eps=1e-6):
    """x: (B, C, H, W) array. Returns x / (||x||_2 over C + eps)."""
    B, C, H, W = x.shape
    HW = H * W
    itemsize = jnp.dtype(x.dtype).itemsize

    # --- choose a lane-dense spatial tile TH (multiple of 128) -------------
    # VMEM cost of one grid step ~ 4 * C * TH * itemsize (input + output,
    # each double-buffered by the Pallas pipeline).
    max_th = _VMEM_BUDGET_BYTES // max(1, 4 * C * itemsize)
    max_th = max(_LANE, (max_th // _LANE) * _LANE)
    th_cap = min(max_th, _TH_CAP)

    hw128 = _round_up(HW, _LANE)
    TH = hw128 if hw128 <= th_cap else th_cap
    HW_pad = _round_up(HW, TH)          # pad so the grid tiles evenly, lane-dense
    grid_t = HW_pad // TH

    # --- wrapper-side layout glue ------------------------------------------
    x3 = x.reshape(B, C, HW)
    if HW_pad != HW:
        # Zero padding is safe: padded columns produce norm=0 -> output 0,
        # and are sliced off below.
        x3 = jnp.pad(x3, ((0, 0), (0, 0), (0, HW_pad - HW)))

    kernel = functools.partial(_l2n_kernel, eps=eps)

    out3 = pl.pallas_call(
        kernel,
        out_shape=jax.ShapeDtypeStruct((B, C, HW_pad), x.dtype),
        grid_spec=pltpu.PrefetchScalarGridSpec(
            num_scalar_prefetch=0,
            grid=(B, grid_t),
            in_specs=[pl.BlockSpec((1, C, TH), lambda b, t: (b, 0, t))],
            out_specs=pl.BlockSpec((1, C, TH), lambda b, t: (b, 0, t)),
        ),
        compiler_params=pltpu.CompilerParams(
            # No cross-grid accumulation anywhere -> both axes parallel
            # (keeps v7x megacore sharding eligible even when B == 1).
            dimension_semantics=("parallel", "parallel"),
        ),
        cost_estimate=pl.CostEstimate(
            flops=3 * B * C * HW_pad,
            transcendentals=2 * B * HW_pad,          # sqrt + reciprocal per column
            bytes_accessed=2 * B * C * HW_pad * itemsize,
        ),
    )(x3)

    if HW_pad != HW:
        out3 = out3[:, :, :HW]
    return out3.reshape(B, C, H, W)


if __name__ == "__main__":
    key = jax.random.PRNGKey(0)
    B, C, H, W = 2, 4, 16, 16
    x = jax.random.normal(key, (B, C, H, W), dtype=jnp.float32)

    y = l2n_pallas(x, eps=1e-6)
    y = jax.block_until_ready(y)

    # Reference check (plain JAX) against torch's l2n semantics.
    norm = jnp.sqrt(jnp.sum(x * x, axis=1, keepdims=True))
    y_ref = x / (norm + 1e-6)
    assert y.shape == (B, C, H, W)
    assert jnp.allclose(y, y_ref, atol=1e-5, rtol=1e-5), "mismatch vs reference"

    print("KERNEL_OK")
</pallas_src>

<mosaic_0001>
module attributes {stable_mosaic.version = 11 : i64} {
  func.func @_l2n_kernel(%arg0: i32, %arg1: i32, %arg2: memref<1x4x256xf32, #tpu.memory_space<vmem>>, %arg3: memref<1x4x256xf32, #tpu.memory_space<vmem>>) attributes {dimension_semantics = [#tpu.dimension_semantics<parallel>, #tpu.dimension_semantics<parallel>], iteration_bounds = array<i64: 2, 1>, scalar_prefetch = 0 : i64, scratch_operands = 0 : i64, tpu.core_type = #tpu.core_type<tc>, window_params = [{transform_indices = @transform_0, window_bounds = array<i64: 1, 4, 256>}, {transform_indices = @transform_1, window_bounds = array<i64: 1, 4, 256>}]} {
    %c0 = arith.constant 0 : index
    %c0_0 = arith.constant 0 : index
    %c0_1 = arith.constant 0 : index
    %0 = vector.load %arg2[%c0, %c0_0, %c0_1] : memref<1x4x256xf32, #tpu.memory_space<vmem>>, vector<1x4x256xf32>
    %1 = arith.mulf %0, %0 : vector<1x4x256xf32>
    %cst = arith.constant dense<0.000000e+00> : vector<1x256xf32>
    %2 = vector.multi_reduction <add>, %1, %cst [1] : vector<1x4x256xf32> to vector<1x256xf32>
    %3 = vector.shape_cast %2 : vector<1x256xf32> to vector<1x1x256xf32>
    %4 = math.sqrt %3 : vector<1x1x256xf32>
    %cst_2 = arith.constant 9.99999997E-7 : f32
    %5 = vector.broadcast %cst_2 : f32 to vector<1x1x256xf32>
    %6 = arith.addf %4, %5 : vector<1x1x256xf32>
    %7 = tpu.reciprocal %6 {approx = true} : vector<1x1x256xf32> -> vector<1x1x256xf32>
    %8 = arith.mulf %6, %7 : vector<1x1x256xf32>
    %cst_3 = arith.constant 2.000000e+00 : f32
    %9 = vector.broadcast %cst_3 : f32 to vector<1x1x256xf32>
    %10 = arith.subf %9, %8 : vector<1x1x256xf32>
    %11 = arith.mulf %7, %10 : vector<1x1x256xf32>
    %12 = vector.broadcast %11 : vector<1x1x256xf32> to vector<1x4x256xf32>
    %13 = arith.mulf %0, %12 : vector<1x4x256xf32>
    %c0_4 = arith.constant 0 : index
    %c0_5 = arith.constant 0 : index
    %c0_6 = arith.constant 0 : index
    %14 = vector.load %arg3[%c0_4, %c0_5, %c0_6] : memref<1x4x256xf32, #tpu.memory_space<vmem>>, vector<1x4x256xf32>
    tpu.vector_store %arg3[%c0_4, %c0_5, %c0_6], %13 {strides = array<i32>} : memref<1x4x256xf32, #tpu.memory_space<vmem>>, vector<1x4x256xf32>,
    return
  }
  func.func @transform_0(%arg0: i32, %arg1: i32) -> (i32, i32, i32) {
    %c0_i32 = arith.constant 0 : i32
    %c0_i32_0 = arith.constant 0 : i32
    return %arg0, %c0_i32, %arg1 : i32, i32, i32
  }
  func.func @transform_1(%arg0: i32, %arg1: i32) -> (i32, i32, i32) {
    %c0_i32 = arith.constant 0 : i32
    %c0_i32_0 = arith.constant 0 : i32
    return %arg0, %c0_i32, %arg1 : i32, i32, i32
  }
}

</mosaic_0001>

<bundles_post_ra>
// kernel: tpu_custom_call.1
= control target key start
LH: loop header
LB: loop body
LE: loop exit
PB: predicated region body
PF: predicated region fallthrough
CT: control target
= control target key end

     0   :  { %6 = vsyncpa [#allocation3], 0  ;;  %s693_s0 = inlined_call_operand.hbm [shape: f32[2,4,256], index: 0, kind: input, shape index: {}]   ;;  %s694_s1 = inlined_call_operand.hbm [shape: f32[2,4,256], index: 1, kind: output, shape index: {}]  }
   0x1   :  { %8 = vsyncpa [#allocation3 + $0x1], 0 }
   0x2   :  { %9 = vsyncpa [#allocation4], 0 }
   0x3   :  { %11 = vsyncpa [#allocation4 + $0x1], 0  ;;  %s517_s6 = smov 0   ;;  %s519_s7 = smov 0  }
   0x4   :  { %s521_s8 = smov 0   ;;  %s523_s9 = smov 0  }
   0x5   :  { %s525_s10 = smov 0   ;;  %s527_s11 = smov 0  }
   0x6 LB: > { %s304_s12 = sadd.s32 4294967295, %s503_s11   ;;  %s305_s13 = sadd.s32 4294967294, %s503_s11   ;;  %s503_s11 = sphi %s527_s11, %s17_s11   ;;  %s499_s10 = sphi %s525_s10, %s710_s10   ;;  %s495_s9 = sphi %s523_s9, %s709_s9   ;;  %s491_s8 = sphi %s521_s8, %s708_s8   ;;  %s487_s7 = sphi %s519_s7, %s707_s7   ;;  %s483_s6 = sphi %s517_s6, %s706_s6  }
   0x7   : > { %s29_s14 = sadd.s32 1, %s499_s10  ;;  %s38_s15 = sadd.s32 1, %s491_s8 }
   0x8   : > { %p31_p0 = scmp.ge.s32.totalorder %s29_s14, 2  ;;  %p45_p1 = scmp.ne.s32.totalorder %s491_s8, %s487_s7 }
   0x9   : > { %p46_p2 = scmp.eq.s32.totalorder %s503_s11, 0  ;;  %p51_p3 = scmp.ne.s32.totalorder %s487_s7, %s483_s6 }
   0xa   : > { %s712_s14 = smov (%p31_p0, %s29_s14), 0  ;;  %p52_p5 = scmp.eq.s32.totalorder %s304_s12, 0 }
   0xb   : > { %p558_p4 = por %p46_p2, %p45_p1  ;;  %s33_s17 = ssub.s32 %s499_s10, %s712_s14 }
   0xc   : > { %p77_p6 = scmp.eq.s32.totalorder %s304_s12, 1  ;;  %p36_p7 = scmp.eq.s32.totalorder %s33_s17, 0 }
   0xd   : > { %p564_p8 = por %p52_p5, %p51_p3  ;;  %p83_p10 = scmp.eq.s32.totalorder %s305_s13, 1 }
   0xe   : > { %p568_p9 = por %p77_p6, %p45_p1  ;;  %p333_p13 = scmp.lt.s32.totalorder %s503_s11, 2 }
   0xf   : > { %s573_s20 = scalar_select %p36_p7, %s491_s8, %s38_s15  }
  0x10   : > { %s698_s19 = scalar_select %p568_p9, 1, 0 }
  0x11   : > { %p575_p11 = por %p83_p10, %p51_p3  ;;  %s103_s22 = sand.u32 1, %s491_s8  }
  0x12   : > { %s308_s23 = sshll.u32 %s103_s22, 3  ;;  %s319_s24 = sshll.u32 %s499_s10, 7 }
  0x13   : > { %s699_s21 = scalar_select %p575_p11, 1, 0 }
  0x14   : > { %s586_s27 = scalar_lea.hbm %s693_s0, %s319_s24  ;;  %s107_s28 = scalar_lea.vmem [#allocation2], %s308_s23 }
  0x15   : > { %s117_s29 = sshll.u32 %s107_s28, 4  ;;  %p592_p0 = pnand %p333_p13, %p558_p4  ;;  %s588_s29 = int_to_ptr.vmem [resolvable:$true] %s117_s29 }
  0x16   : > { %s104_s2 = scalar_lea.sflag [#allocation3], %s103_s22  ;;  %s391_s3 = scalar_lea.hbm %s586_s27, 128 }
  0x17   : > { %p392_p3 = scmp.ne.s32.totalorder %s586_s27, %s391_s3  ;;  %p393_p5 = pneg %p592_p0 }
  0x18   : > { %s396_s12 = scalar_lea.hbm %s693_s0, 256  ;;  %p397_p4 = scmp.lt.u32.totalorder %s586_s27, %s693_s0 }
  0x19   : > { %p394_p6 = pnand %p393_p5, %p392_p3  ;;  %p398_p10 = scmp.lt.u32.totalorder %s396_s12, %s391_s3 }
  0x1a   : > { %p400_p12 = scmp.lt.u32.totalorder %s391_s3, %s586_s27 }
  0x1b   : > { %p395_p7 = pneg %p394_p6  ;;  %p399_p13 = por %p398_p10, %p397_p4 }
  0x1d   : > { %p401_p1 = por %p400_p12, %p399_p13 }
  0x1f   : > { %p402_p2 = pnand %p401_p1, %p395_p7 }
  0x21   : > { %405 = shalt.err (!%p402_p2)
}
  0x22   : > { %s406_s16 = scalar_lea.vmem %s588_s29, 128  ;;  %s505_s17 = smov [#allocation2]  }
  0x23   : > { %p407_p3 = scmp.ne.s32.totalorder %s588_s29, %s406_s16  ;;  %s411_s22 = sshll.u32 %s505_s17, 4  ;;  %s412_s22 = int_to_ptr.vmem [resolvable:$false] %s411_s22 }
  0x24   : > { %s413_s23 = scalar_lea.vmem %s412_s22, 256  ;;  %p414_p9 = scmp.lt.s32.totalorder %s588_s29, %s412_s22 }
  0x25   : > { %p409_p6 = pnand %p407_p3, %p393_p5  ;;  %p415_p4 = scmp.lt.s32.totalorder %s413_s23, %s406_s16 }
  0x27   : > { %p410_p11 = pneg %p409_p6  ;;  %p416_p10 = por %p415_p4, %p414_p9 }
  0x29   : > { %p417_p12 = pnand %p416_p10, %p410_p11 }
  0x2b   : > { %420 = shalt.err (!%p417_p12)
}
  0x2c   : > { %328 = dma.hbm_to_vmem [thread:$0]  (!%p592_p0), %s586_s27, 128, %s588_s29, %s104_s2  }
  0x2d   : > { %p701_p1 = scmp.lt.s32.totalorder %s503_s11, 3  ;;  %p702_p2 = scmp.ge.s32.totalorder %s503_s11, 1 }
  0x2f   : > { %p123_p5 = pnand %p702_p2, %p701_p1 }
  0x30   : > { %s628_s24 = sand.u32 (!%p123_p5), 1, %s487_s7  }
  0x31   : > { %126 = sbr.rel (%p123_p5) target bundleno = 127 (0x7f), region = 24  ;;  %s312_s25 = sshll.u32 (!%p123_p5), %s628_s24, 3 }
  0x32   : > { %s129_s26 = scalar_lea.sflag (!%p123_p5), [#allocation3], %s628_s24  ;;  %s132_s28 = scalar_lea.vmem (!%p123_p5), [#allocation2], %s312_s25 }
  0x38   : > { %474 = dma.done.wait (%p564_p8), %s129_s26, 128  }
  0x39   : > { %476 = vsyncadd (%p564_p8), %s129_s26, 4294967168  ;;  %v153_v0 = vld [vmem:[%s132_s28] sm:$0xff]  ;;  %vm158_vm0 = vcmask 1043456   ;;  %s150_s18 = scalar_lea.vmem [#allocation5], %s312_s25  ;;  %s320_s29 = sshll.u32 %s495_s9, 7 }
  0x3a   : > { %v154_v1 = vmul.f32 %v153_v0, %v153_v0  ;;  %s220_s27 = sshll.u32 %s150_s18, 4  ;;  %s646_s3 = scalar_lea.hbm %s694_s1, %s320_s29  ;;  %s641_s27 = int_to_ptr.vmem [resolvable:$true] %s220_s27 }
  0x3b   : > { %s204_s4 = scalar_lea.sflag [#allocation4], %s628_s24  ;;  %s421_s5 = scalar_lea.vmem %s641_s27, 128 }
  0x3c   : > { %v156_v2 = vcombine.high %v154_v1, %v154_v1  ;;  %v159_v3 = vsel %vm158_vm0, %v154_v1, 0.0  ;;  %p422_p8 = scmp.ne.s32.totalorder %s641_s27, %s421_s5  ;;  %p703_p9 = scmp.ne.s32.totalorder %s698_s19, 0 }
  0x3d   : > { %v160_v4 = vrot.slane %v159_v3, 4  ;;  %s506_s9 = smov [#allocation5]  }
  0x3e   : > { %v166_v5 = vsel %vm158_vm0, %v156_v2, 0.0  ;;  %p423_p11 = pnand %p422_p8, %p703_p9  ;;  %s425_s12 = sshll.u32 %s506_s9, 4  ;;  %s426_s12 = int_to_ptr.vmem [resolvable:$false] %s425_s12 }
  0x3f   : > { %v161_v6 = vadd.f32 %v160_v4, %v159_v3  ;;  %v167_v7 = vrot.slane %v166_v5, 4  ;;  %s427_s13 = scalar_lea.vmem %s426_s12, 256  ;;  %p428_p7 = scmp.lt.s32.totalorder %s641_s27, %s426_s12 }
  0x40   : > { %p424_p0 = pneg %p423_p11  ;;  %p429_p13 = scmp.lt.s32.totalorder %s427_s13, %s421_s5 }
  0x41   : > { %v162_v8 = vrot.slane %v161_v6, 2  ;;  %v168_v9 = vadd.f32 %v167_v7, %v166_v5 }
  0x42   : > { %p430_p3 = por %p429_p13, %p428_p7 }
  0x43   : > { %v163_v10 = vadd.f32 %v162_v8, %v161_v6  ;;  %v169_v11 = vrot.slane %v168_v9, 2 }
  0x44   : > { %p431_p6 = pnand %p430_p3, %p424_p0 }
  0x45   : > { %v164_v12 = vrot.slane %v163_v10, 1  ;;  %v170_v13 = vadd.f32 %v169_v11, %v168_v9 }
  0x47   : > { %v165_v14 = vadd.f32 %v164_v12, %v163_v10  ;;  %v171_v15 = vrot.slane %v170_v13, 1 }
  0x49   : > { %v172_v16 = vadd.f32 %v171_v15, %v170_v13  ;;  %383 = vrsqrt.f32 %v165_v14  ;;  %vm175_vm1 = vcmp.eq.f32.partialorder %v165_v14, inf  ;;  %v178_v18 = vand.u32 2147483648, %v165_v14 }
  0x4a   : > { %vm177_vm2 = vcmp.eq.f32.partialorder %v165_v14, 0.0 }
  0x4b   : > { %385 = vrsqrt.f32 %v172_v16  ;;  %vm182_vm3 = vcmp.eq.f32.partialorder %v172_v16, inf  ;;  %v185_v21 = vand.u32 2147483648, %v172_v16  ;;  %vm184_vm4 = vcmp.eq.f32.partialorder %v172_v16, 0.0 }
  0x53   : > { %v384_v17 = vpop.eup %383 }
  0x54   : > { %v174_v19 = vmul.f32 %v384_v17, %v165_v14 }
  0x55   : > { %v386_v20 = vpop.eup %385 }
  0x56   : > { %v176_v22 = vsel %vm175_vm1, %v165_v14, %v174_v19  ;;  %v181_v23 = vmul.f32 %v386_v20, %v172_v16 }
  0x57   : > { %v179_v24 = vsel %vm177_vm2, %v178_v18, %v176_v22 }
  0x58   : > { %v183_v25 = vsel %vm182_vm3, %v172_v16, %v181_v23  ;;  %v187_v26 = vadd.f32 1e-06, %v179_v24 }
  0x59   : > { %v186_v27 = vsel %vm184_vm4, %v185_v21, %v183_v25 }
  0x5a   : > { %v188_v28 = vadd.f32 1e-06, %v186_v27  ;;  %387 = vrcp.f32 %v187_v26 }
  0x5c   : > { %389 = vrcp.f32 %v188_v28 }
  0x64   : > { %v388_v29 = vpop.eup %387 }
  0x65   : > { %v191_v30 = vmul.f32 %v388_v29, %v187_v26 }
  0x66   : > { %v390_v31 = vpop.eup %389 }
  0x67   : > { %v192_v32 = vmul.f32 %v390_v31, %v188_v28  ;;  %v193_v33 = vsub.f32 2.0, %v191_v30 }
  0x69   : > { %v194_v34 = vsub.f32 2.0, %v192_v32  ;;  %v195_v35 = vmul.f32 %v388_v29, %v193_v33 }
  0x6b   : > { %v196_v36 = vmul.f32 %v390_v31, %v194_v34 }
  0x6d   : > { %v199_v37 = vcombine.low %v195_v35, %v196_v36 }
  0x6f   : > { %v201_v38 = vmul.f32 %v199_v37, %v153_v0 }
  0x71   : > { %202 = vst [vmem:[%s150_s18] sm:$0xff] %v201_v38 }
  0x72   : > { %434 = shalt.err (!%p431_p6)
}
  0x73   : > { %s435_s15 = scalar_lea.hbm %s646_s3, 128  ;;  %s439_s22 = scalar_lea.hbm %s694_s1, 256 }
  0x74   : > { %p436_p4 = scmp.ne.s32.totalorder %s646_s3, %s435_s15  ;;  %p440_p1 = scmp.lt.u32.totalorder %s646_s3, %s694_s1 }
  0x75   : > { %p441_p2 = scmp.lt.u32.totalorder %s439_s22, %s435_s15  ;;  %p443_p8 = scmp.lt.u32.totalorder %s435_s15, %s646_s3 }
  0x76   : > { %p437_p10 = pnand %p436_p4, %p703_p9 }
  0x77   : > { %p442_p5 = por %p441_p2, %p440_p1 }
  0x78   : > { %p438_p12 = pneg %p437_p10 }
  0x79   : > { %p444_p11 = por %p443_p8, %p442_p5 }
  0x7b   : > { %p445_p0 = pnand %p444_p11, %p438_p12 }
  0x7d   : > { %448 = shalt.err (!%p445_p0)
}
  0x7e   : > { %323 = dma.vmem_to_hbm [thread:$0]  (%p703_p9), %s641_s27, 128, %s646_s3, %s204_s4  }
  0x7f PF: > { %s232_s25 = sand.u32 1, %s483_s6   ;;  %p704_p7 = scmp.ne.s32.totalorder %s699_s21, 0 }
  0x80   : > { %p705_p13 = scmp.ge.s32.totalorder %s503_s11, 2  ;;  %s233_s26 = scalar_lea.sflag [#allocation4], %s232_s25 }
  0x82   : > { %p330_p3 = pnand %p705_p13, %p704_p7 }
  0x84   : > { %478 = dma.done.wait (!%p330_p3), %s233_s26, 128  }
  0x85   : > { %480 = vsyncadd (!%p330_p3), %s233_s26, 4294967168  ;;  %s17_s11 = sadd.s32 1, %s503_s11   ;;  %s706_s6 = smov %s487_s7 }
  0x86   : > { %p14_p6 = scmp.ge.s32.totalorder %s17_s11, 4   ;;  %s707_s7 = smov %s491_s8 }
  0x87   : > { %s708_s8 = smov %s573_s20  ;;  %s709_s9 = smov %s499_s10 }
  0x88   : > { %s710_s10 = smov %s712_s14  ;;  %16 = sbr.rel (!%p14_p6) target bundleno = 6 (0x6), region = 69 }
  0x8f   :  { %238 = vsyncpa [#allocation3], 1 }
  0x90   :  { %240 = vsyncpa [#allocation3 + $0x1], 1 }
  0x91   :  { %241 = vsyncpa [#allocation4], 1 }
  0x92   :  { %243 = vsyncpa [#allocation4 + $0x1], 1 }

</bundles_post_ra>
